<compile_context>
chip_gen: v7x
topology: tpu7x:2x2x1
jax: 0.10.0
libtpu: 0.0.40
codegen_flags: <defaults>
</compile_context>

<pallas_src>
import functools

import jax
import jax.numpy as jnp
from jax import lax
from jax.experimental import pallas as pl
from jax.experimental.pallas import tpu as pltpu

BN_EPS = 1e-5
LANE = 128


def _round_up(x, m):
    return ((x + m - 1) // m) * m


# ----------------------------------------------------------------------------
# Pass 1: K-tiled MXU matmul; emits only per-(M,N)-tile partial BN statistics.
# ----------------------------------------------------------------------------
def _stats_kernel(p_ref, w_ref, stats_ref, acc_ref):
    k = pl.program_id(2)

    @pl.when(k == 0)
    def _():
        acc_ref[...] = jnp.zeros_like(acc_ref)

    acc_ref[...] += jnp.dot(p_ref[...], w_ref[...],
                            preferred_element_type=jnp.float32)

    @pl.when(k == pl.num_programs(2) - 1)
    def _():
        y = acc_ref[...]
        s = jnp.sum(y, axis=0, keepdims=True)           # [1, TILE_N]
        ss = jnp.sum(y * y, axis=0, keepdims=True)      # [1, TILE_N]
        stats_ref[...] = jnp.concatenate([s, ss], axis=0)[None, :, :]


# ----------------------------------------------------------------------------
# Pass 2: recompute the K-tiled matmul, fuse BN (precomputed scale/shift) +
# LeakyReLU, write the final activation directly (no f32 y intermediate).
# ----------------------------------------------------------------------------
def _conv_bn_lrelu_kernel(p_ref, w_ref, scale_ref, shift_ref, o_ref, acc_ref,
                          *, slope):
    k = pl.program_id(2)

    @pl.when(k == 0)
    def _():
        acc_ref[...] = jnp.zeros_like(acc_ref)

    acc_ref[...] += jnp.dot(p_ref[...], w_ref[...],
                            preferred_element_type=jnp.float32)

    @pl.when(k == pl.num_programs(2) - 1)
    def _():
        z = acc_ref[...] * scale_ref[...] + shift_ref[...]
        o_ref[...] = jnp.where(z >= 0, z, slope * z)


# ----------------------------------------------------------------------------
# Glue: im2col (already in compute dtype), padding, NCHW <-> NHWC plumbing
# ----------------------------------------------------------------------------
def _im2col(x_nhwc, kh, kw, stride):
    """x_nhwc is already spatially padded. Returns ([N*OH*OW, KH*KW*C], OH, OW)."""
    n, h, w, c = x_nhwc.shape
    oh = (h - kh) // stride + 1
    ow = (w - kw) // stride + 1
    cols = []
    for i in range(kh):
        for j in range(kw):
            cols.append(
                x_nhwc[:, i:i + stride * oh:stride, j:j + stride * ow:stride, :])
    patches = jnp.stack(cols, axis=3)                   # [N, OH, OW, KH*KW, C]
    return patches.reshape(n * oh * ow, kh * kw * c), oh, ow


def paper_encoder_block(x_nchw, params, *, kernel, slope=0.2,
                        compute_dtype=jnp.bfloat16,
                        tile_m=1024, tile_k_max=512, tile_n_max=256):
    """Forward pass of PaperEncoderBlock. Input/output are NCHW float32."""
    stride = 2
    pad = kernel // 2

    # NHWC; cast to the MXU compute dtype BEFORE im2col so the KH*KW-blown-up
    # patch tensor is written at 2 bytes/elem (bf16) instead of 4.
    x = jnp.transpose(x_nchw, (0, 2, 3, 1)).astype(compute_dtype)
    n = x.shape[0]
    x_p = jnp.pad(x, ((0, 0), (pad, pad), (pad, pad), (0, 0)))

    # TODO(synk): build patches inside the kernel from overlapping padded
    # row-bands of x (manual pltpu.make_async_copy) to remove the KH*KW x
    # im2col HBM blow-up entirely; kept as bf16 JAX glue here.
    patches, oh, ow = _im2col(x_p, kernel, kernel, stride)
    m, k = patches.shape

    w = params["conv_w"]                                # [Cout, Cin, KH, KW]
    cout = w.shape[0]
    # weight -> [KH*KW*Cin, Cout], matching the im2col patch ordering
    w2d = jnp.transpose(w, (2, 3, 1, 0)).reshape(k, cout)

    # Lane-dense K / Cout padding; K and Cout are further padded up to a
    # multiple of their tile so the grid divides evenly (zero pad is inert).
    k_pad = _round_up(k, LANE)
    tile_k = min(tile_k_max, k_pad)
    k_pad = _round_up(k_pad, tile_k)

    c_pad = _round_up(cout, LANE)
    tile_n = min(tile_n_max, c_pad)
    c_pad = _round_up(c_pad, tile_n)

    # M tiling: multiple of 16 (bf16 packs 16 rows / sublane group); keep
    # >= 2 tiles when m allows so both v7x TensorCores see "parallel" work.
    tile_m = min(tile_m, max(16, _round_up((m + 1) // 2, 16)))
    m_pad = _round_up(m, tile_m)

    num_m, num_n, num_k = m_pad // tile_m, c_pad // tile_n, k_pad // tile_k

    # Single pad op on the already-compute-dtype patches (no extra cast copy).
    patches_p = jnp.pad(patches, ((0, m_pad - m), (0, k_pad - k)))
    w2d_p = jnp.pad(w2d, ((0, k_pad - k), (0, c_pad - cout))).astype(compute_dtype)

    # VMEM budget derived from actual tile bytes (double-buffered patches,
    # weight, out tiles + f32 accumulator), capped at 40 MiB for v7x's 64 MiB.
    in_bytes = jnp.dtype(compute_dtype).itemsize
    needed = (2 * tile_m * tile_k * in_bytes
              + 2 * tile_k * tile_n * in_bytes
              + tile_m * tile_n * 4
              + 2 * tile_m * tile_n * 4
              + 6 * 2 * tile_n * 4)
    vmem_limit = max(min(max(2 * needed, 16 << 20), 40 << 20),
                     needed + (4 << 20))
    cparams = pltpu.CompilerParams(
        dimension_semantics=("parallel", "parallel", "arbitrary"),
        vmem_limit_bytes=vmem_limit,
    )

    p_spec = pl.BlockSpec((tile_m, tile_k), lambda i, j, kk: (i, kk))
    w_spec = pl.BlockSpec((tile_k, tile_n), lambda i, j, kk: (kk, j))

    # ---- pass 1: partial BN statistics only (no y intermediate) ------------
    stats = pl.pallas_call(
        _stats_kernel,
        out_shape=jax.ShapeDtypeStruct((num_m, 2, c_pad), jnp.float32),
        grid_spec=pltpu.PrefetchScalarGridSpec(
            num_scalar_prefetch=0,
            grid=(num_m, num_n, num_k),
            in_specs=[p_spec, w_spec],
            out_specs=pl.BlockSpec((1, 2, tile_n), lambda i, j, kk: (i, 0, j)),
            scratch_shapes=[pltpu.VMEM((tile_m, tile_n), jnp.float32)]),
        compiler_params=cparams,
    )(patches_p, w2d_p)

    # ---- tiny cross-tile reduction + BN scale/shift (plain JAX) ------------
    # Zero-padded rows/channels contribute 0 to sum/sumsq, so divide by the
    # true element count m (training-mode biased batch statistics). The conv
    # bias is dropped: it is exactly cancelled by the batch-mean subtraction.
    total = jnp.sum(stats, axis=0)                       # [2, c_pad]
    mean = total[0] / m
    # NOTE: E[y^2]-E[y]^2 in f32; switch to a shifted/two-pass variance if this
    # block feeds training with large activation means relative to their spread.
    var = jnp.maximum(total[1] / m - mean * mean, 0.0)
    gamma = jnp.pad(params["bn_gamma"].astype(jnp.float32), (0, c_pad - cout))
    beta = jnp.pad(params["bn_beta"].astype(jnp.float32), (0, c_pad - cout))
    inv_std = lax.rsqrt(var + BN_EPS)
    scale = (gamma * inv_std).reshape(1, c_pad)
    shift = (beta - mean * gamma * inv_std).reshape(1, c_pad)

    # ---- pass 2: recompute matmul, fuse BN + LeakyReLU, write output -------
    out2d = pl.pallas_call(
        functools.partial(_conv_bn_lrelu_kernel, slope=slope),
        out_shape=jax.ShapeDtypeStruct((m_pad, c_pad), jnp.float32),
        grid_spec=pltpu.PrefetchScalarGridSpec(
            num_scalar_prefetch=0,
            grid=(num_m, num_n, num_k),
            in_specs=[p_spec, w_spec,
                      pl.BlockSpec((1, tile_n), lambda i, j, kk: (0, j)),
                      pl.BlockSpec((1, tile_n), lambda i, j, kk: (0, j))],
            out_specs=pl.BlockSpec((tile_m, tile_n), lambda i, j, kk: (i, j)),
            scratch_shapes=[pltpu.VMEM((tile_m, tile_n), jnp.float32)]),
        compiler_params=cparams,
    )(patches_p, w2d_p, scale, shift)

    # TODO(synk): keep NHWC downstream (or emit the final layout from out_spec)
    # to avoid this extra XLA slice + NHWC->NCHW transpose pass over the output.
    out = out2d[:m, :cout].reshape(n, oh, ow, cout)
    return jnp.transpose(out, (0, 3, 1, 2))              # -> NCHW


# ----------------------------------------------------------------------------
# Deterministic parameter init (shapes from PaperEncoderBlock.__init__)
# ----------------------------------------------------------------------------
def init_params(key, in_dim, out_dim, kernel):
    k1, k2 = jax.random.split(key)
    bound = 1.0 / float(jnp.sqrt(in_dim * kernel * kernel))
    conv_w = jax.random.uniform(k1, (out_dim, in_dim, kernel, kernel),
                                jnp.float32, -bound, bound)
    conv_b = jax.random.uniform(k2, (out_dim,), jnp.float32, -bound, bound)
    return dict(conv_w=conv_w, conv_b=conv_b,
                bn_gamma=jnp.ones((out_dim,), jnp.float32),
                bn_beta=jnp.zeros((out_dim,), jnp.float32))


# ----------------------------------------------------------------------------
# Pure-JAX reference (Conv2d + bias -> BN train-mode -> LeakyReLU)
# ----------------------------------------------------------------------------
def _reference(x_nchw, params, *, kernel, slope=0.2):
    stride, pad = 2, kernel // 2
    y = lax.conv_general_dilated(
        x_nchw, params["conv_w"], window_strides=(stride, stride),
        padding=[(pad, pad)] * 2,
        dimension_numbers=("NCHW", "OIHW", "NCHW"))
    y = y + params["conv_b"][None, :, None, None]
    mean = jnp.mean(y, axis=(0, 2, 3), keepdims=True)
    var = jnp.mean(jnp.square(y - mean), axis=(0, 2, 3), keepdims=True)
    y_hat = (y - mean) * lax.rsqrt(var + BN_EPS)
    z = (params["bn_gamma"][None, :, None, None] * y_hat
         + params["bn_beta"][None, :, None, None])
    return jnp.where(z >= 0, z, slope * z)


if __name__ == "__main__":
    key = jax.random.PRNGKey(0)
    kx, kp = jax.random.split(key)

    in_dim, out_dim, kernel = 4, 8, 4          # pad = kernel//2 = 2, stride = 2
    x = jax.random.normal(kx, (2, in_dim, 16, 16), jnp.float32)   # NCHW
    params = init_params(kp, in_dim, out_dim, kernel)

    ref = _reference(x, params, kernel=kernel)

    # f32 MXU path (tight check; bias drop is exactly cancelled by train-BN).
    y_f32 = paper_encoder_block(x, params, kernel=kernel,
                                compute_dtype=jnp.float32)
    y_f32 = jax.block_until_ready(y_f32)
    assert y_f32.shape == (2, out_dim, 9, 9), y_f32.shape
    err_f32 = float(jnp.max(jnp.abs(y_f32 - ref)))
    assert err_f32 < 2e-3, err_f32

    # bf16 MXU path (v6e/v7x-native; f32 accumulation, f32 BN statistics).
    y_bf16 = paper_encoder_block(x, params, kernel=kernel,
                                 compute_dtype=jnp.bfloat16)
    y_bf16 = jax.block_until_ready(y_bf16)
    assert y_bf16.shape == (2, out_dim, 9, 9), y_bf16.shape
    err_bf16 = float(jnp.max(jnp.abs(y_bf16 - ref)))
    assert err_bf16 < 5e-2, err_bf16

    print("KERNEL_OK")
</pallas_src>

<mosaic_0001>
module attributes {stable_mosaic.version = 11 : i64} {
  func.func @_stats_kernel(%arg0: i32, %arg1: i32, %arg2: i32, %arg3: memref<96x128xf32, #tpu.memory_space<vmem>>, %arg4: memref<128x128xf32, #tpu.memory_space<vmem>>, %arg5: memref<1x2x128xf32, #tpu.memory_space<vmem>>, %arg6: memref<96x128xf32, #tpu.memory_space<vmem>>) attributes {dimension_semantics = [#tpu.dimension_semantics<parallel>, #tpu.dimension_semantics<parallel>, #tpu.dimension_semantics<arbitrary>], iteration_bounds = array<i64: 2, 1, 1>, scalar_prefetch = 0 : i64, scratch_operands = 1 : i64, tpu.core_type = #tpu.core_type<tc>, window_params = [{transform_indices = @transform_0, window_bounds = array<i64: 96, 128>}, {transform_indices = @transform_1, window_bounds = array<i64: 128, 128>}, {transform_indices = @transform_2, window_bounds = array<i64: 1, 2, 128>}]} {
    %c0_i32 = arith.constant 0 : i32
    %0 = arith.cmpi eq, %arg2, %c0_i32 : i32
    %1 = arith.extui %0 : i1 to i32
    %c0_i32_0 = arith.constant 0 : i32
    %2 = arith.cmpi ne, %1, %c0_i32_0 : i32
    scf.if %2 {
      %cst_10 = arith.constant 0.000000e+00 : f32
      %12 = vector.broadcast %cst_10 : f32 to vector<96x128xf32>
      %c0_11 = arith.constant 0 : index
      %c0_12 = arith.constant 0 : index
      %13 = vector.load %arg6[%c0_11, %c0_12] : memref<96x128xf32, #tpu.memory_space<vmem>>, vector<96x128xf32>
      tpu.vector_store %arg6[%c0_11, %c0_12], %12 {strides = array<i32>} : memref<96x128xf32, #tpu.memory_space<vmem>>, vector<96x128xf32>,
    } else {
    }
    %c0 = arith.constant 0 : index
    %c0_1 = arith.constant 0 : index
    %3 = vector.load %arg6[%c0, %c0_1] : memref<96x128xf32, #tpu.memory_space<vmem>>, vector<96x128xf32>
    %c0_2 = arith.constant 0 : index
    %c0_3 = arith.constant 0 : index
    %4 = vector.load %arg3[%c0_2, %c0_3] : memref<96x128xf32, #tpu.memory_space<vmem>>, vector<96x128xf32>
    %c0_4 = arith.constant 0 : index
    %c0_5 = arith.constant 0 : index
    %5 = vector.load %arg4[%c0_4, %c0_5] : memref<128x128xf32, #tpu.memory_space<vmem>>, vector<128x128xf32>
    %cst = arith.constant dense<0.000000e+00> : vector<96x128xf32>
    %6 = tpu.matmul %4, %5, %cst {dimension_numbers = #tpu.dot_dimension_numbers<[1], [0], [0], [1], [0, 0, 1, 1], [], []>} : vector<96x128xf32>, vector<128x128xf32>, vector<96x128xf32> -> vector<96x128xf32>
    %7 = arith.addf %3, %6 : vector<96x128xf32>
    %c0_6 = arith.constant 0 : index
    %c0_7 = arith.constant 0 : index
    %8 = vector.load %arg6[%c0_6, %c0_7] : memref<96x128xf32, #tpu.memory_space<vmem>>, vector<96x128xf32>
    tpu.vector_store %arg6[%c0_6, %c0_7], %7 {strides = array<i32>} : memref<96x128xf32, #tpu.memory_space<vmem>>, vector<96x128xf32>,
    %c0_i32_8 = arith.constant 0 : i32
    %9 = arith.cmpi eq, %arg2, %c0_i32_8 : i32
    %10 = arith.extui %9 : i1 to i32
    %c0_i32_9 = arith.constant 0 : i32
    %11 = arith.cmpi ne, %10, %c0_i32_9 : i32
    scf.if %11 {
      %c0_10 = arith.constant 0 : index
      %c0_11 = arith.constant 0 : index
      %12 = vector.load %arg6[%c0_10, %c0_11] : memref<96x128xf32, #tpu.memory_space<vmem>>, vector<96x128xf32>
      %cst_12 = arith.constant dense<0.000000e+00> : vector<128xf32>
      %13 = vector.multi_reduction <add>, %12, %cst_12 [0] : vector<96x128xf32> to vector<128xf32>
      %14 = vector.shape_cast %13 : vector<128xf32> to vector<1x128xf32>
      %15 = arith.mulf %12, %12 : vector<96x128xf32>
      %cst_13 = arith.constant dense<0.000000e+00> : vector<128xf32>
      %16 = vector.multi_reduction <add>, %15, %cst_13 [0] : vector<96x128xf32> to vector<128xf32>
      %17 = vector.shape_cast %16 : vector<128xf32> to vector<1x128xf32>
      %18 = tpu.concatenate %14, %17 in 0 : vector<1x128xf32>, vector<1x128xf32> -> vector<2x128xf32>
      %19 = vector.shape_cast %18 : vector<2x128xf32> to vector<1x2x128xf32>
      %c0_14 = arith.constant 0 : index
      %c0_15 = arith.constant 0 : index
      %c0_16 = arith.constant 0 : index
      %20 = vector.load %arg5[%c0_14, %c0_15, %c0_16] : memref<1x2x128xf32, #tpu.memory_space<vmem>>, vector<1x2x128xf32>
      tpu.vector_store %arg5[%c0_14, %c0_15, %c0_16], %19 {strides = array<i32>} : memref<1x2x128xf32, #tpu.memory_space<vmem>>, vector<1x2x128xf32>,
    } else {
    }
    return
  }
  func.func @transform_0(%arg0: i32, %arg1: i32, %arg2: i32) -> (i32, i32) {
    %c0_i32 = arith.constant 0 : i32
    return %arg0, %arg2 : i32, i32
  }
  func.func @transform_1(%arg0: i32, %arg1: i32, %arg2: i32) -> (i32, i32) {
    %c0_i32 = arith.constant 0 : i32
    return %arg2, %arg1 : i32, i32
  }
  func.func @transform_2(%arg0: i32, %arg1: i32, %arg2: i32) -> (i32, i32, i32) {
    %c0_i32 = arith.constant 0 : i32
    %c0_i32_0 = arith.constant 0 : i32
    return %arg0, %c0_i32, %arg1 : i32, i32, i32
  }
}

</mosaic_0001>

<bundles_post_ra>
// kernel: tpu_custom_call.1
= control target key start
LH: loop header
LB: loop body
LE: loop exit
PB: predicated region body
PF: predicated region fallthrough
CT: control target
= control target key end

     0   :  { %7 = vsyncpa [#allocation4], 0  ;;  %s1211_s0 = inlined_call_operand.hbm [shape: f32[192,128], index: 0, kind: input, shape index: {}]   ;;  %s1212_s1 = inlined_call_operand.hbm [shape: f32[128,128], index: 1, kind: input, shape index: {}]   ;;  %s1213_s2 = inlined_call_operand.hbm [shape: f32[2,2,128], index: 2, kind: output, shape index: {}]  }
   0x1   :  { %9 = vsyncpa [#allocation4 + $0x1], 0 }
   0x2   :  { %10 = vsyncpa [#allocation7], 0 }
   0x3   :  { %11 = vsyncpa [#allocation5], 0 }
   0x4   :  { %13 = vsyncpa [#allocation5 + $0x1], 0  ;;  %s979_s9 = smov 0   ;;  %s981_s10 = smov 0  }
   0x5   :  { %s983_s11 = smov 0   ;;  %s985_s12 = smov 0  }
   0x6   :  { %s987_s13 = smov 0   ;;  %s989_s14 = smov 0  }
   0x7 LB: > { %s596_s15 = sadd.s32 4294967295, %s957_s14   ;;  %s597_s16 = sadd.s32 4294967294, %s957_s14   ;;  %s957_s14 = sphi %s989_s14, %s19_s14   ;;  %s953_s13 = sphi %s987_s13, %s1236_s13   ;;  %s949_s12 = sphi %s985_s12, %s1235_s12   ;;  %s945_s11 = sphi %s983_s11, %s1234_s11   ;;  %s941_s10 = sphi %s981_s10, %s1233_s10   ;;  %s937_s9 = sphi %s979_s9, %s1232_s9  }
   0x8   : > { %p60_p0 = scmp.ne.s32.totalorder %s941_s10, %s937_s9  ;;  %p1013_p1 = scmp.eq.s32.totalorder %s596_s15, 0 }
   0x9   : > { %p1017_p2 = scmp.eq.s32.totalorder %s596_s15, 1  ;;  %p120_p3 = scmp.eq.s32.totalorder %s597_s16, 1 }
   0xa   : > { %s1218_s17 = scalar_select %p1013_p1, 1, 0 }
   0xb   : > { %s1219_s18 = scalar_select %p1017_p2, 1, 0 }
   0xc   : > { %p1023_p4 = por %p1013_p1, %p60_p0  ;;  %p598_p5 = scmp.ge.s32.totalorder %s957_s14, 1 }
   0xd   : > { %p1028_p6 = por %p120_p3, %p60_p0  ;;  %p127_p7 = scmp.lt.s32.totalorder %s957_s14, 3 }
   0xe   : > { %s1220_s19 = scalar_select %p1023_p4, 1, 0 }
   0xf   : > { %s1221_s20 = scalar_select %p1028_p6, 1, 0 }
  0x10   : > { %p1033_p8 = pnand %p598_p5, %p127_p7  ;;  %s959_s22 = smov [#allocation6]  }
  0x11   : > { %s143_s23 = sshll.u32 %s959_s22, 4  ;;  %s38_s25 = sadd.s32 1, %s953_s13  ;;  %s144_s23 = int_to_ptr.vmem [resolvable:$true] %s143_s23 }
  0x12   : > { %s1222_s21 = scalar_select %p1033_p8, 1, 0 }
  0x13   : > { %p746_p9 = pneg %p1033_p8  ;;  %s813_s28 = scalar_lea.hbm %s1212_s1, 2048 }
  0x14   : > { %p814_p12 = scmp.ne.s32.totalorder %s1212_s1, %s813_s28  ;;  %p820_p5 = scmp.lt.u32.totalorder %s813_s28, %s1212_s1 }
  0x15   : > { %p1042_p11 = pnand %p746_p9, %p1013_p1 }
  0x17   : > { %p815_p13 = pneg %p1042_p11 }
  0x19   : > { %p816_p0 = pnand %p815_p13, %p814_p12 }
  0x1b   : > { %p817_p3 = pneg %p816_p0 }
  0x1d   : > { %p822_p7 = pnand %p820_p5, %p817_p3 }
  0x1f   : > { %825 = shalt.err (!%p822_p7)
}
  0x20   : > { %s826_s5 = scalar_lea.vmem %s144_s23, 2048  ;;  %p834_p1 = scmp.lt.s32.totalorder %s144_s23, %s144_s23 }
  0x21   : > { %p827_p9 = scmp.ne.s32.totalorder %s144_s23, %s826_s5  ;;  %p835_p4 = scmp.lt.s32.totalorder %s826_s5, %s826_s5 }
  0x23   : > { %p829_p10 = pnand %p827_p9, %p815_p13  ;;  %p836_p8 = por %p835_p4, %p834_p1 }
  0x25   : > { %p830_p6 = pneg %p829_p10 }
  0x27   : > { %p837_p2 = pnand %p836_p8, %p830_p6 }
  0x29   : > { %840 = shalt.err (!%p837_p2)
}
  0x2a   : > { %s960_s6 = smov 128   ;;  %s961_s7 = smov 8  }
  0x2b   : > { %749 = dma.hbm_to_vmem [thread:$0]  (!%p1042_p11), %s1212_s1, 2048, %s144_s23, [#allocation7], %s960_s6, %s960_s6, %s961_s7  }
  0x2c   : > { %p40_p1 = scmp.ge.s32.totalorder %s38_s25, 2  ;;  %s47_s16 = sadd.s32 1, %s945_s11 }
  0x2d   : > { %p54_p2 = scmp.ne.s32.totalorder %s945_s11, %s941_s10  ;;  %p55_p4 = scmp.eq.s32.totalorder %s957_s14, 0 }
  0x2e   : > { %s1238_s25 = smov (%p40_p1, %s38_s25), 0  ;;  %p1224_p8 = scmp.ne.s32.totalorder %s1219_s18, 0 }
  0x2f   : > { %p56_p6 = por %p55_p4, %p54_p2  ;;  %s42_s24 = ssub.s32 %s953_s13, %s1238_s25 }
  0x30   : > { %p1074_p10 = por %p1224_p8, %p54_p2  ;;  %p759_p12 = scmp.lt.s32.totalorder %s957_s14, 2 }
  0x31   : > { %p45_p13 = scmp.eq.s32.totalorder %s42_s24, 0  ;;  %s157_s26 = sand.u32 1, %s945_s11  }
  0x32   : > { %s736_s27 = smul.u32 96, %s157_s26  ;;  %p1086_p11 = pnand %p759_p12, %p56_p6 }
  0x33   : > { %s1083_s28 = scalar_select %p45_p13, %s945_s11, %s47_s16  }
  0x34   : > { %s609_s23 = smul.u32 1536, %s953_s13  ;;  %s161_s29 = scalar_lea.vmem [#allocation3], %s736_s27 }
  0x35   : > { %s169_s30 = sshll.u32 %s161_s29, 4  ;;  %s1097_s8 = scalar_lea.sflag [#allocation4], %s157_s26  ;;  %s1095_s30 = int_to_ptr.vmem [resolvable:$true] %s169_s30 }
  0x36   : > { %s1093_s5 = scalar_lea.hbm %s1211_s0, %s609_s23  ;;  %p843_p3 = pneg %p1086_p11 }
  0x37   : > { %s841_s15 = scalar_lea.hbm %s1093_s5, 1536  ;;  %s846_s27 = scalar_lea.hbm %s1211_s0, 3072 }
  0x38   : > { %p842_p0 = scmp.ne.s32.totalorder %s1093_s5, %s841_s15  ;;  %p847_p9 = scmp.lt.u32.totalorder %s1093_s5, %s1211_s0 }
  0x39   : > { %p848_p1 = scmp.lt.u32.totalorder %s846_s27, %s841_s15  ;;  %p850_p4 = scmp.lt.u32.totalorder %s841_s15, %s1093_s5 }
  0x3a   : > { %p844_p5 = pnand %p843_p3, %p842_p0 }
  0x3b   : > { %p849_p2 = por %p848_p1, %p847_p9 }
  0x3c   : > { %p845_p7 = pneg %p844_p5 }
  0x3d   : > { %p851_p6 = por %p850_p4, %p849_p2 }
  0x3f   : > { %p852_p8 = pnand %p851_p6, %p845_p7 }
  0x41   : > { %855 = shalt.err (!%p852_p8)
}
  0x42   : > { %s856_s26 = scalar_lea.vmem %s1095_s30, 1536  ;;  %s962_s4 = smov [#allocation3]  }
  0x43   : > { %p857_p12 = scmp.ne.s32.totalorder %s1095_s30, %s856_s26  ;;  %s861_s18 = sshll.u32 %s962_s4, 4  ;;  %s862_s18 = int_to_ptr.vmem [resolvable:$false] %s861_s18 }
  0x44   : > { %s863_s16 = scalar_lea.vmem %s862_s18, 3072  ;;  %p864_p5 = scmp.lt.s32.totalorder %s1095_s30, %s862_s18 }
  0x45   : > { %p859_p13 = pnand %p857_p12, %p843_p3  ;;  %p865_p9 = scmp.lt.s32.totalorder %s863_s16, %s856_s26 }
  0x47   : > { %p860_p0 = pneg %p859_p13  ;;  %p866_p1 = por %p865_p9, %p864_p5 }
  0x49   : > { %p867_p2 = pnand %p866_p1, %p860_p0 }
  0x4b   : > { %870 = shalt.err (!%p867_p2)
}
  0x4c   : > { %753 = dma.hbm_to_vmem [thread:$0]  (!%p1086_p11), %s1093_s5, 1536, %s1095_s30, %s1097_s8, %s960_s6, %s960_s6, %s961_s7  }
  0x4d   : > { %p1227_p3 = scmp.ne.s32.totalorder %s1222_s21, 0 }
  0x4e   : > { %s1131_s15 = sand.u32 (!%p1227_p3), 1, %s941_s10   ;;  %p1228_p7 = scmp.ne.s32.totalorder (!%p1227_p3), %s1220_s19, 0 }
  0x4f   : > { %181 = sbr.rel (%p1227_p3) target bundleno = 391 (0x187), region = 28  ;;  %s184_s27 = scalar_lea.sflag (!%p1227_p3), [#allocation4], %s1131_s15 }
  0x50   : > { %s737_s24 = smul.u32 (!%p1227_p3), 96, %s1131_s15 }
  0x52   : > { %s1135_s23 = scalar_lea.vmem (!%p1227_p3), [#allocation3], %s737_s24 }
  0x56   : > { %924 = dma.done.wait (%p1228_p7), %s184_s27, 1536  }
  0x57   : > { %926 = vsyncadd (%p1228_p7), %s184_s27, 4294965760  ;;  %p1229_p11 = scmp.ne.s32.totalorder %s1218_s17, 0 }
  0x59   : > { %928 = dma.done.wait (%p1229_p11), [#allocation7], 2048  }
  0x5a   : > { %930 = vsyncadd (%p1229_p11), [#allocation7], 4294965248  ;;  %v254_v0 = vld [vmem:[#allocation6] sm:$0xff]  ;;  %v255_v1 = vld [vmem:[#allocation6 + $0x8] sm:$0xff]  ;;  %s604_s17 = sshll.u32 %s1131_s15, 1  ;;  %s606_s19 = sshll.u32 %s949_s12, 5 }
  0x5b   : > { %v256_v2 = vld [vmem:[#allocation6 + $0x10] sm:$0xff]  ;;  %v688_v3 = vpack.c.bf16 %v255_v1, %v254_v0  ;;  %v257_v4 = vld [vmem:[#allocation6 + $0x18] sm:$0xff]  ;;  %v258_v6 = vld [vmem:[#allocation6 + $0x20] sm:$0xff]  ;;  %s211_s21 = scalar_lea.vmem [#allocation8], %s604_s17  ;;  %vm480_vm0 = vcmask 1040384   ;;  %s1162_s3 = scalar_lea.hbm %s1213_s2, %s606_s19 }
  0x5c   : > { %v692_v5 = vpack.c.bf16 %v257_v4, %v256_v2  ;;  %v259_v7 = vld [vmem:[#allocation6 + $0x28] sm:$0xff]  ;;  %v242_v9 = vld [vmem:[%s1135_s23] sm:$0xff]  ;;  %v260_v10 = vld [vmem:[#allocation6 + $0x30] sm:$0xff]  ;;  %s498_s6 = sshll.u32 %s211_s21, 4  ;;  %s484_s5 = scalar_lea.sflag [#allocation5], %s1131_s15  ;;  %s1164_s6 = int_to_ptr.vmem [resolvable:$true] %s498_s6 }
  0x5d   : > { %689 = vmatprep.subr.bf16.mxu0 %v688_v3  ;;  %720 = vmatprep.subr.bf16.mxu1 %v688_v3  ;;  %v696_v8 = vpack.c.bf16 %v259_v7, %v258_v6  ;;  %v261_v11 = vld [vmem:[#allocation6 + $0x38] sm:$0xff]  ;;  %v248_v12 = vld [vmem:[%s1135_s23 + $0x30] sm:$0xff]  ;;  %v262_v14 = vld [vmem:[#allocation6 + $0x40] sm:$0xff]  ;;  %s871_s8 = scalar_lea.vmem %s1164_s6, 32  ;;  %s963_s12 = smov [#allocation8]  }
  0x5e   : > { %691 = vmatpush3.bf16.msra.mxu0 %v688_v3  ;;  %728 = vmatpush3.bf16.msra.mxu1 %v688_v3  ;;  %v700_v13 = vpack.c.bf16 %v261_v11, %v260_v10  ;;  %v263_v15 = vld [vmem:[#allocation6 + $0x48] sm:$0xff]  ;;  %v264_v17 = vld [vmem:[#allocation6 + $0x50] sm:$0xff]  ;;  %v265_v18 = vld [vmem:[#allocation6 + $0x58] sm:$0xff]  ;;  %p872_p4 = scmp.ne.s32.totalorder %s1164_s6, %s871_s8  ;;  %s875_s29 = sshll.u32 %s963_s12, 4  ;;  %s876_s29 = int_to_ptr.vmem [resolvable:$false] %s875_s29 }
  0x5f   : > { %693 = vmatprep.subr.bf16.mxu0 %v692_v5  ;;  %721 = vmatprep.subr.bf16.mxu1 %v692_v5  ;;  %v704_v16 = vpack.c.bf16 %v263_v15, %v262_v14  ;;  %v708_v19 = vpack.c.bf16 %v265_v18, %v264_v17  ;;  %v266_v20 = vld [vmem:[#allocation6 + $0x60] sm:$0xff]  ;;  %v267_v21 = vld [vmem:[#allocation6 + $0x68] sm:$0xff]  ;;  %v268_v23 = vld [vmem:[#allocation6 + $0x70] sm:$0xff]  ;;  %s877_s26 = scalar_lea.vmem %s876_s29, 64  ;;  %p878_p12 = scmp.lt.s32.totalorder %s1164_s6, %s876_s29 }
  0x60   : > { %670 = vmatprep.mubr.f32.mxu0 %v242_v9  ;;  %679 = vmatprep.mubr.f32.mxu1 %v248_v12  ;;  %v712_v22 = vpack.c.bf16 %v267_v21, %v266_v20  ;;  %v269_v24 = vld [vmem:[#allocation6 + $0x78] sm:$0xff]  ;;  %v243_v26 = vld [vmem:[%s1135_s23 + $0x8] sm:$0xff]  ;;  %v244_v28 = vld [vmem:[%s1135_s23 + $0x10] sm:$0xff]  ;;  %p873_p6 = pnand %p872_p4, %p1074_p10  ;;  %p879_p13 = scmp.lt.s32.totalorder %s877_s26, %s871_s8 }
  0x61   : > { %v716_v25 = vpack.c.bf16 %v269_v24, %v268_v23  ;;  %v249_v27 = vld [vmem:[%s1135_s23 + $0x38] sm:$0xff]  ;;  %v250_v29 = vld [vmem:[%s1135_s23 + $0x40] sm:$0xff]  ;;  %v251_v31 = vld [vmem:[%s1135_s23 + $0x48] sm:$0xff] }
  0x62   : > { %695 = vmatpush3.bf16.msra.mxu0 %v692_v5  ;;  %729 = vmatpush3.bf16.msra.mxu1 %v692_v5  ;;  %v245_v30 = vld [vmem:[%s1135_s23 + $0x18] sm:$0xff]  ;;  %v246_v32 = vld [vmem:[%s1135_s23 + $0x20] sm:$0xff]  ;;  %v252_v33 = vld [vmem:[%s1135_s23 + $0x50] sm:$0xff]  ;;  %p874_p8 = pneg %p873_p6  ;;  %p880_p0 = por %p879_p13, %p878_p12 }
  0x63   : > { %697 = vmatprep.subr.bf16.mxu0 %v696_v8  ;;  %722 = vmatprep.subr.bf16.mxu1 %v696_v8  ;;  %v247_v34 = vld [vmem:[%s1135_s23 + $0x28] sm:$0xff]  ;;  %v253_v35 = vld [vmem:[%s1135_s23 + $0x58] sm:$0xff] }
  0x64   : > { %p881_p5 = pnand %p880_p0, %p874_p8 }
  0x66   : > { %699 = vmatpush3.bf16.msra.mxu0 %v696_v8  ;;  %730 = vmatpush3.bf16.msra.mxu1 %v696_v8 }
  0x67   : > { %701 = vmatprep.subr.bf16.mxu0 %v700_v13  ;;  %723 = vmatprep.subr.bf16.mxu1 %v700_v13 }
  0x6a   : > { %703 = vmatpush3.bf16.msra.mxu0 %v700_v13  ;;  %731 = vmatpush3.bf16.msra.mxu1 %v700_v13 }
  0x6b   : > { %705 = vmatprep.subr.bf16.mxu0 %v704_v16  ;;  %724 = vmatprep.subr.bf16.mxu1 %v704_v16 }
  0x6e   : > { %707 = vmatpush3.bf16.msra.mxu0 %v704_v16  ;;  %732 = vmatpush3.bf16.msra.mxu1 %v704_v16 }
  0x6f   : > { %709 = vmatprep.subr.bf16.mxu0 %v708_v19  ;;  %725 = vmatprep.subr.bf16.mxu1 %v708_v19 }
  0x72   : > { %711 = vmatpush3.bf16.msra.mxu0 %v708_v19  ;;  %733 = vmatpush3.bf16.msra.mxu1 %v708_v19 }
  0x73   : > { %713 = vmatprep.subr.bf16.mxu0 %v712_v22  ;;  %726 = vmatprep.subr.bf16.mxu1 %v712_v22 }
  0x76   : > { %715 = vmatpush3.bf16.msra.mxu0 %v712_v22  ;;  %734 = vmatpush3.bf16.msra.mxu1 %v712_v22 }
  0x77   : > { %717 = vmatprep.subr.bf16.mxu0 %v716_v25  ;;  %727 = vmatprep.subr.bf16.mxu1 %v716_v25 }
  0x7a   : > { %719 = vmatpush3.bf16.msra.mxu0 %v716_v25  ;;  %735 = vmatpush3.bf16.msra.mxu1 %v716_v25 }
  0x7d   : > { %671 = vmatmul.mubr.f32.vlgmr.msra.gmra.mrb[0].mxu0 %v243_v26  ;;  %680 = vmatmul.mubr.f32.vlgmr.msra.gmra.mrb[0].mxu1 %v249_v27 }
  0x7e   : > { %673 = vmatprep.mubr.f32.mxu0 %v244_v28  ;;  %682 = vmatprep.mubr.f32.mxu1 %v250_v29 }
  0x81   : > { %674 = vmatmul.mubr.f32.gmra.mrb[2].mxu0 %v245_v30  ;;  %683 = vmatmul.mubr.f32.gmra.mrb[2].mxu1 %v251_v31 }
  0x82   : > { %676 = vmatprep.mubr.f32.mxu0 %v246_v32  ;;  %685 = vmatprep.mubr.f32.mxu1 %v252_v33 }
  0x85   : > { %677 = vmatmul.mubr.f32.gmra.mrb[4].mxu0 %v247_v34  ;;  %686 = vmatmul.mubr.f32.gmra.mrb[4].mxu1 %v253_v35 }
 0x150   : > { %v672_v36 = vpop.f32.mrb[0].mxu0  ;;  %v681_v37 = vpop.f32.mrb[0].mxu1 }
 0x151   : > { %v452_v38 = vmul.f32 %v672_v36, %v672_v36  ;;  %v336_v39 = vpop.f32.mrb[1].mxu0  ;;  %v366_v40 = vpop.f32.mrb[1].mxu1  ;;  %v458_v2 = vmul.f32 %v681_v37, %v681_v37 }
 0x152   : > { %v434_v41 = vadd.f32 %v672_v36, %v336_v39  ;;  %v451_v42 = vmul.f32 %v336_v39, %v336_v39  ;;  %v457_v63 = vmul.f32 %v366_v40, %v366_v40 }
 0x154   : > { %v463_v43 = vadd.f32 %v452_v38, %v451_v42  ;;  %v675_v44 = vpop.f32.mrb[2].mxu0  ;;  %v684_v45 = vpop.f32.mrb[2].mxu1 }
 0x155   : > { %v346_v46 = vpop.f32.mrb[3].mxu0  ;;  %v376_v47 = vpop.f32.mrb[3].mxu1  ;;  %v454_v50 = vmul.f32 %v675_v44, %v675_v44  ;;  %v460_v8 = vmul.f32 %v684_v45, %v684_v45 }
 0x156   : > { %v435_v48 = vadd.f32 %v434_v41, %v346_v46  ;;  %v453_v49 = vmul.f32 %v346_v46, %v346_v46  ;;  %v459_v5 = vmul.f32 %v376_v47, %v376_v47 }
 0x158   : > { %v464_v51 = vadd.f32 %v463_v43, %v453_v49  ;;  %v678_v52 = vpop.f32.mrb[4].mxu0  ;;  %v436_v53 = vadd.f32 %v675_v44, %v435_v48  ;;  %v687_v54 = vpop.f32.mrb[4].mxu1 }
 0x159   : > { %v356_v55 = vpop.f32.mrb[5].mxu0  ;;  %v386_v56 = vpop.f32.mrb[5].mxu1  ;;  %v456_v60 = vmul.f32 %v678_v52, %v678_v52  ;;  %v462_v14 = vmul.f32 %v687_v54, %v687_v54 }
 0x15a   : > { %v437_v57 = vadd.f32 %v436_v53, %v356_v55  ;;  %v455_v58 = vmul.f32 %v356_v55, %v356_v55  ;;  %v465_v59 = vadd.f32 %v464_v51, %v454_v50  ;;  %v461_v11 = vmul.f32 %v386_v56, %v386_v56 }
 0x15c   : > { %v438_v61 = vadd.f32 %v678_v52, %v437_v57  ;;  %v466_v62 = vadd.f32 %v465_v59, %v455_v58 }
 0x15e   : > { %v467_v0 = vadd.f32 %v466_v62, %v456_v60  ;;  %v439_v1 = vadd.f32 %v438_v61, %v366_v40 }
 0x160   : > { %v468_v3 = vadd.f32 %v467_v0, %v457_v63  ;;  %v440_v4 = vadd.f32 %v681_v37, %v439_v1 }
 0x162   : > { %v441_v6 = vadd.f32 %v440_v4, %v376_v47  ;;  %v469_v7 = vadd.f32 %v468_v3, %v458_v2 }
 0x164   : > { %v470_v9 = vadd.f32 %v469_v7, %v459_v5  ;;  %v442_v10 = vadd.f32 %v684_v45, %v441_v6 }
 0x166   : > { %v443_v12 = vadd.f32 %v442_v10, %v386_v56  ;;  %v471_v13 = vadd.f32 %v470_v9, %v460_v8 }
 0x168   : > { %v444_v15 = vadd.f32 %v687_v54, %v443_v12  ;;  %v472_v16 = vadd.f32 %v471_v13, %v461_v11 }
 0x16a   : > { %v445_v17 = vrot.slane %v444_v15, 4  ;;  %v473_v18 = vadd.f32 %v472_v16, %v462_v14 }
 0x16c   : > { %v446_v19 = vadd.f32 %v445_v17, %v444_v15  ;;  %v474_v20 = vrot.slane %v473_v18, 4 }
 0x16e   : > { %v447_v21 = vrot.slane %v446_v19, 2  ;;  %v475_v22 = vadd.f32 %v474_v20, %v473_v18 }
 0x170   : > { %v448_v23 = vadd.f32 %v447_v21, %v446_v19  ;;  %v476_v24 = vrot.slane %v475_v22, 2 }
 0x172   : > { %v449_v25 = vrot.slane %v448_v23, 1  ;;  %v477_v26 = vadd.f32 %v476_v24, %v475_v22 }
 0x174   : > { %v478_v27 = vrot.slane %v477_v26, 1  ;;  %v450_v28 = vadd.f32 %v449_v25, %v448_v23 }
 0x176   : > { %v479_v29 = vadd.f32 %v478_v27, %v477_v26 }
 0x178   : > { %v481_v30 = vsel %vm480_vm0, %v450_v28, %v479_v29 }
 0x179   : > { %482 = vst [vmem:[%s211_s21] sm:$0x3] %v481_v30 }
 0x17a   : > { %884 = shalt.err (!%p881_p5)
}
 0x17b   : > { %s885_s4 = scalar_lea.hbm %s1162_s3, 32  ;;  %s889_s15 = scalar_lea.hbm %s1213_s2, 64 }
 0x17c   : > { %p886_p9 = scmp.ne.s32.totalorder %s1162_s3, %s885_s4  ;;  %p890_p3 = scmp.lt.u32.totalorder %s1162_s3, %s1213_s2 }
 0x17d   : > { %p891_p7 = scmp.lt.u32.totalorder %s889_s15, %s885_s4  ;;  %p893_p4 = scmp.lt.u32.totalorder %s885_s4, %s1162_s3 }
 0x17e   : > { %p887_p1 = pnand %p886_p9, %p1074_p10 }
 0x17f   : > { %p892_p11 = por %p891_p7, %p890_p3 }
 0x180   : > { %p888_p2 = pneg %p887_p1 }
 0x181   : > { %p894_p6 = por %p893_p4, %p892_p11 }
 0x183   : > { %p895_p8 = pnand %p894_p6, %p888_p2 }
 0x185   : > { %898 = shalt.err (!%p895_p8)
}
 0x186   : > { %744 = dma.vmem_to_hbm [thread:$0]  (%p1074_p10), %s1164_s6, 32, %s1162_s3, %s484_s5  }
 0x187 PF: > { %s510_s23 = sand.u32 1, %s937_s9   ;;  %p1230_p12 = scmp.ne.s32.totalorder %s1221_s20, 0 }
 0x188   : > { %p1231_p13 = scmp.ge.s32.totalorder %s957_s14, 2  ;;  %s511_s17 = scalar_lea.sflag [#allocation5], %s510_s23 }
 0x18a   : > { %p755_p0 = pnand %p1231_p13, %p1230_p12 }
 0x18c   : > { %932 = dma.done.wait (!%p755_p0), %s511_s17, 32  }
 0x18d   : > { %934 = vsyncadd (!%p755_p0), %s511_s17, 4294967264  ;;  %s19_s14 = sadd.s32 1, %s957_s14   ;;  %s1232_s9 = smov %s941_s10 }
 0x18e   : > { %p16_p5 = scmp.ge.s32.totalorder %s19_s14, 4   ;;  %s1233_s10 = smov %s945_s11 }
 0x18f   : > { %s1234_s11 = smov %s1083_s28  ;;  %s1235_s12 = smov %s953_s13 }
 0x190   : > { %s1236_s13 = smov %s1238_s25  ;;  %18 = sbr.rel (!%p16_p5) target bundleno = 7 (0x7), region = 86 }
 0x197   :  { %516 = vsyncpa [#allocation4], 1 }
 0x198   :  { %518 = vsyncpa [#allocation4 + $0x1], 1 }
 0x199   :  { %519 = vsyncpa [#allocation7], 1 }
 0x19a   :  { %520 = vsyncpa [#allocation5], 1 }
 0x19b   :  { %522 = vsyncpa [#allocation5 + $0x1], 1 }

</bundles_post_ra>
